<compile_context>
chip_gen: v7x
topology: tpu7x:2x2x1
jax: 0.10.0
libtpu: 0.0.40
codegen_flags: <defaults>
</compile_context>

<pallas_src>
import jax
import jax.numpy as jnp
from jax.experimental import pallas as pl
from jax.experimental.pallas import tpu as pltpu

_LANE = 512            # lane-dense last dim (multiple of 128 -> unmasked vst)
_MIN_PALLAS_TILES = 2  # below this many tiles, fused XLA mul-add wins


def _default_block_rows():
    """Per-generation sublane tile height (rows of 512 f32 lanes)."""
    try:
        kind = jax.devices()[0].device_kind.lower()
    except Exception:
        kind = ""
    if ("v6" in kind) or ("v7" in kind) or ("7x" in kind):
        # 4 MiB tile; double-buffered in+out = 16 MiB < 32 MiB scoped default.
        return 2048
    # v5e (16 MiB scoped-VMEM default) and anything unknown: 2 MiB tile.
    return 1024


def _linear1x1_kernel(wb_ref, x_ref, o_ref):
    # wb_ref: (2,) f32 SMEM scalars [w, b].
    # x_ref / o_ref: (block_rows, _LANE) VMEM tiles (memory-bound streaming).
    w = wb_ref[0]
    b = wb_ref[1]
    o_ref[...] = (x_ref[...] * w + b).astype(o_ref.dtype)


def neural_network_forward(x, w, b, *, block_rows=None):
    """PyTorch nn.Linear(1, 1) forward: y = x @ W.T + b.

    x: (N, 1), w: (1, 1), b: (1,)  ->  (N, 1).  Demo assumes f32.
    """
    n = x.shape[0]
    dtype = x.dtype

    w_s = w.reshape(-1)[0]
    b_s = b.reshape(-1)[0]

    if block_rows is None:
        block_rows = _default_block_rows()
    block_rows = max(8, (block_rows // 8) * 8)   # sublane multiple (f32)
    tile_elems = block_rows * _LANE

    # ---- small-N fallback: fused XLA mul-add, no kernel dispatch ----------
    if n < _MIN_PALLAS_TILES * tile_elems:
        return x * w_s.astype(dtype) + b_s.astype(dtype)

    # ---- lane-aligned bulk via free metadata reshape ----------------------
    n_tiles = n // tile_elems          # >= _MIN_PALLAS_TILES by construction
    bulk = n_tiles * tile_elems

    x_flat = x.reshape(-1)                                     # (N,1)->(N,)
    x2d = x_flat[:bulk].reshape(n_tiles * block_rows, _LANE)   # bitcast if aligned
    wb = jnp.stack([w_s, b_s]).astype(jnp.float32)             # SMEM scalars (f32)

    out2d = pl.pallas_call(
        _linear1x1_kernel,
        out_shape=jax.ShapeDtypeStruct((n_tiles * block_rows, _LANE), dtype),
        grid_spec=pltpu.PrefetchScalarGridSpec(
            num_scalar_prefetch=0,
            grid=(n_tiles,),
            in_specs=[
                pl.BlockSpec(memory_space=pltpu.MemorySpace.SMEM),    # [w, b]
                pl.BlockSpec((block_rows, _LANE), lambda i: (i, 0)),  # x tile
            ],
            out_specs=pl.BlockSpec((block_rows, _LANE), lambda i: (i, 0)),
        ),
        compiler_params=pltpu.CompilerParams(
            dimension_semantics=("parallel",)),
    )(wb, x2d)

    y_bulk = out2d.reshape(-1)
    if bulk == n:
        # Tile-aligned: pure reshapes in and out, no extra HBM passes.
        return y_bulk.reshape(n, 1)

    # Ragged (< one tile) tail: tiny fused XLA epilogue, then stitch.
    y_tail = x_flat[bulk:] * w_s.astype(dtype) + b_s.astype(dtype)
    return jnp.concatenate([y_bulk, y_tail]).reshape(n, 1)


if __name__ == "__main__":
    key = jax.random.PRNGKey(0)
    kw, kb = jax.random.split(key)

    # nn.Linear(1, 1) default init: U(-1/sqrt(fan_in), +1/sqrt(fan_in)), fan_in=1.
    w = jax.random.uniform(kw, (1, 1), jnp.float32, -1.0, 1.0)
    b = jax.random.uniform(kb, (1,), jnp.float32, -1.0, 1.0)

    # (1) The module's actual usage: x = arange(100).unsqueeze(1).
    #     n=100 -> small-N fused-XLA fallback path.
    x_small = jnp.arange(100, dtype=jnp.float32).reshape(100, 1)
    y_small = jax.block_until_ready(neural_network_forward(x_small, w, b))
    assert y_small.shape == (100, 1)
    assert jnp.allclose(y_small, x_small @ w.T + b, atol=1e-6)

    # (2) Exercise the Pallas bulk path at small demo sizes by overriding the
    #     tile height: 8 rows * 512 lanes = 4096 elems per tile.
    rows = 8
    tile = rows * _LANE

    # 2a: tile-aligned n (free reshape in/out, no tail, grid=(3,)).
    n_aligned = 3 * tile
    x_a = (jnp.arange(n_aligned, dtype=jnp.float32) * 1e-3).reshape(n_aligned, 1)
    y_a = jax.block_until_ready(neural_network_forward(x_a, w, b, block_rows=rows))
    assert y_a.shape == (n_aligned, 1)
    assert jnp.allclose(y_a, x_a @ w.T + b, atol=1e-5)

    # 2b: ragged n (bulk kernel, grid=(2,), plus tiny XLA tail).
    n_ragged = 2 * tile + 37
    x_r = (jnp.arange(n_ragged, dtype=jnp.float32) * 1e-3).reshape(n_ragged, 1)
    y_r = jax.block_until_ready(neural_network_forward(x_r, w, b, block_rows=rows))
    assert y_r.shape == (n_ragged, 1)
    assert jnp.allclose(y_r, x_r @ w.T + b, atol=1e-5)

    print("KERNEL_OK")
</pallas_src>

<mosaic_0001>
module attributes {stable_mosaic.version = 11 : i64} {
  func.func @_linear1x1_kernel(%arg0: i32, %arg1: memref<2xf32, #tpu.memory_space<smem>>, %arg2: memref<8x512xf32, #tpu.memory_space<vmem>>, %arg3: memref<8x512xf32, #tpu.memory_space<vmem>>) attributes {dimension_semantics = [#tpu.dimension_semantics<parallel>], iteration_bounds = array<i64: 3>, scalar_prefetch = 0 : i64, scratch_operands = 0 : i64, tpu.core_type = #tpu.core_type<tc>, window_params = [{transform_indices = @transform_0, window_bounds = array<i64: 2>}, {transform_indices = @transform_1, window_bounds = array<i64: 8, 512>}, {transform_indices = @transform_2, window_bounds = array<i64: 8, 512>}]} {
    %c0 = arith.constant 0 : index
    %0 = memref.load %arg1[%c0] : memref<2xf32, #tpu.memory_space<smem>>
    %c1 = arith.constant 1 : index
    %1 = memref.load %arg1[%c1] : memref<2xf32, #tpu.memory_space<smem>>
    %c0_0 = arith.constant 0 : index
    %c0_1 = arith.constant 0 : index
    %2 = vector.load %arg2[%c0_0, %c0_1] : memref<8x512xf32, #tpu.memory_space<vmem>>, vector<8x512xf32>
    %3 = vector.broadcast %0 : f32 to vector<8x512xf32>
    %4 = arith.mulf %2, %3 : vector<8x512xf32>
    %5 = vector.broadcast %1 : f32 to vector<8x512xf32>
    %6 = arith.addf %4, %5 : vector<8x512xf32>
    %c0_2 = arith.constant 0 : index
    %c0_3 = arith.constant 0 : index
    %7 = vector.load %arg3[%c0_2, %c0_3] : memref<8x512xf32, #tpu.memory_space<vmem>>, vector<8x512xf32>
    tpu.vector_store %arg3[%c0_2, %c0_3], %6 {strides = array<i32>} : memref<8x512xf32, #tpu.memory_space<vmem>>, vector<8x512xf32>,
    return
  }
  func.func @transform_0(%arg0: i32) -> i32 {
    %c0_i32 = arith.constant 0 : i32
    %c0_i32_0 = arith.constant 0 : i32
    return %c0_i32 : i32
  }
  func.func @transform_1(%arg0: i32) -> (i32, i32) {
    %c0_i32 = arith.constant 0 : i32
    %c0_i32_0 = arith.constant 0 : i32
    return %arg0, %c0_i32 : i32, i32
  }
  func.func @transform_2(%arg0: i32) -> (i32, i32) {
    %c0_i32 = arith.constant 0 : i32
    %c0_i32_0 = arith.constant 0 : i32
    return %arg0, %c0_i32 : i32, i32
  }
}

</mosaic_0001>

<bundles_post_ra>
// kernel: tpu_custom_call.1
= control target key start
LH: loop header
LB: loop body
LE: loop exit
PB: predicated region body
PF: predicated region fallthrough
CT: control target
= control target key end

     0   :  { %7 = vsyncpa [#allocation5], 0  ;;  %s701_s0 = inlined_call_operand.hbm [shape: f32[2], index: 0, kind: input, shape index: {}]   ;;  %s702_s1 = inlined_call_operand.hbm [shape: f32[24,512], index: 1, kind: input, shape index: {}]   ;;  %s703_s2 = inlined_call_operand.hbm [shape: f32[24,512], index: 2, kind: output, shape index: {}]  }
   0x1   :  { %8 = vsyncpa [#allocation3], 0 }
   0x2   :  { %10 = vsyncpa [#allocation3 + $0x1], 0 }
   0x3   :  { %11 = vsyncpa [#allocation4], 0 }
   0x4   :  { %13 = vsyncpa [#allocation4 + $0x1], 0  ;;  %s498_s9 = smov 0   ;;  %s500_s10 = smov 0  }
   0x5   :  { %s502_s11 = smov 0   ;;  %s504_s12 = smov 0  }
   0x6 LB: > { %s519_s13 = sadd.s32 4294967295, %s478_s12   ;;  %s289_s14 = sadd.s32 4294967294, %s478_s12   ;;  %s478_s12 = sphi %s504_s12, %s723_s12   ;;  %s474_s11 = sphi %s502_s11, %s722_s11   ;;  %s470_s10 = sphi %s500_s10, %s721_s10   ;;  %s466_s9 = sphi %s498_s9, %s720_s9  }
   0x7   : > { %p60_p0 = scmp.ne.s32.totalorder %s470_s10, %s466_s9  ;;  %p704_p1 = scmp.eq.s32.totalorder %s519_s13, 0 }
   0x8   : > { %p90_p3 = scmp.eq.s32.totalorder %s289_s14, 2  ;;  %p290_p5 = scmp.ge.s32.totalorder %s478_s12, 1 }
   0x9   : > { %p528_p4 = por %p704_p1, %p60_p0  ;;  %p97_p7 = scmp.lt.s32.totalorder %s478_s12, 4 }
   0xa   : > { %p533_p6 = por %p90_p3, %p60_p0  ;;  %s543_s18 = sadd.s32 1, %s478_s12  }
   0xb   : > { %s707_s15 = scalar_select %p528_p4, 1, 0 }
   0xc   : > { %s708_s16 = scalar_select %p533_p6, 1, 0 }
   0xd   : > { %p538_p8 = pnand %p290_p5, %p97_p7  ;;  %s44_s19 = ssub.s32 %s478_s12, %s543_s18 }
   0xe   : > { %s47_s20 = sadd.s32 1, %s474_s11  ;;  %p556_p11 = scmp.eq.s32.totalorder %s44_s19, 0 }
   0xf   : > { %p316_p9 = pneg %p538_p8  ;;  %p54_p12 = scmp.ne.s32.totalorder %s474_s11, %s470_s10 }
  0x10   : > { %p55_p13 = scmp.eq.s32.totalorder %s478_s12, 0  ;;  %p329_p0 = scmp.lt.s32.totalorder %s478_s12, 3 }
  0x11   : > { %p552_p10 = pnand %p316_p9, %p704_p1  ;;  %s365_s25 = scalar_lea.hbm %s701_s0, 16 }
  0x12   : > { %p366_p3 = scmp.ne.s32.totalorder %s701_s0, %s365_s25  ;;  %p372_p1 = scmp.lt.u32.totalorder %s365_s25, %s701_s0 }
  0x13   : > { %p367_p5 = pneg %p552_p10 }
  0x15   : > { %p368_p7 = pnand %p367_p5, %p366_p3 }
  0x17   : > { %p369_p9 = pneg %p368_p7 }
  0x19   : > { %p374_p2 = pnand %p372_p1, %p369_p9 }
  0x1b   : > { %377 = shalt.err (!%p374_p2)
}
  0x1c   : > { %s480_s30 = smov [#allocation2]   ;;  %p56_p1 = por %p55_p13, %p54_p12 }
  0x1d   : > { %319 = dma.hbm_to_smem (!%p552_p10), %s701_s0, 16, %s480_s30, [#allocation5]  }
  0x1e   : > { %s583_s5 = scalar_select %p556_p11, %s474_s11, %s47_s20  }
  0x1f   : > { %p712_p2 = scmp.eq.s32.totalorder %s519_s13, 2  ;;  %s119_s7 = sand.u32 1, %s474_s11  }
  0x20   : > { %s306_s8 = sshll.u32 %s478_s12, 9  ;;  %s293_s14 = sshll.u32 %s119_s7, 5 }
  0x21   : > { %p595_p3 = por %p712_p2, %p54_p12  ;;  %s604_s23 = scalar_lea.hbm %s702_s1, %s306_s8 }
  0x22   : > { %s123_s20 = scalar_lea.vmem [#allocation6], %s293_s14  ;;  %p608_p10 = pnand %p329_p0, %p56_p1 }
  0x23   : > { %s713_s6 = scalar_select %p595_p3, 1, 0 }
  0x24   : > { %s131_s22 = sshll.u32 %s123_s20, 4  ;;  %s120_s25 = scalar_lea.sflag [#allocation3], %s119_s7  ;;  %s612_s22 = int_to_ptr.vmem [resolvable:$true] %s131_s22 }
  0x25   : > { %s378_s26 = scalar_lea.hbm %s604_s23, 512  ;;  %p380_p12 = pneg %p608_p10 }
  0x26   : > { %p379_p11 = scmp.ne.s32.totalorder %s604_s23, %s378_s26  ;;  %s383_s29 = scalar_lea.hbm %s702_s1, 1536 }
  0x27   : > { %p384_p0 = scmp.lt.u32.totalorder %s604_s23, %s702_s1  ;;  %p385_p7 = scmp.lt.u32.totalorder %s383_s29, %s378_s26 }
  0x28   : > { %p381_p13 = pnand %p380_p12, %p379_p11  ;;  %p387_p1 = scmp.lt.u32.totalorder %s378_s26, %s604_s23 }
  0x29   : > { %p386_p9 = por %p385_p7, %p384_p0 }
  0x2a   : > { %p382_p5 = pneg %p381_p13 }
  0x2b   : > { %p388_p2 = por %p387_p1, %p386_p9 }
  0x2d   : > { %p389_p6 = pnand %p388_p2, %p382_p5 }
  0x2f   : > { %392 = shalt.err (!%p389_p6)
}
  0x30   : > { %s393_s4 = scalar_lea.vmem %s612_s22, 512  ;;  %s481_s7 = smov [#allocation6]  }
  0x31   : > { %p394_p11 = scmp.ne.s32.totalorder %s612_s22, %s393_s4  ;;  %s398_s8 = sshll.u32 %s481_s7, 4  ;;  %s399_s8 = int_to_ptr.vmem [resolvable:$false] %s398_s8 }
  0x32   : > { %s400_s14 = scalar_lea.vmem %s399_s8, 1024  ;;  %p401_p4 = scmp.lt.s32.totalorder %s612_s22, %s399_s8 }
  0x33   : > { %p396_p13 = pnand %p394_p11, %p380_p12  ;;  %p402_p0 = scmp.lt.s32.totalorder %s400_s14, %s393_s4 }
  0x35   : > { %p397_p3 = pneg %p396_p13  ;;  %p403_p7 = por %p402_p0, %p401_p4 }
  0x37   : > { %p404_p9 = pnand %p403_p7, %p397_p3 }
  0x39   : > { %407 = shalt.err (!%p404_p9)
}
  0x3a   : > { %323 = dma.hbm_to_vmem [thread:$0]  (!%p608_p10), %s604_s23, 512, %s612_s22, %s120_s25  }
  0x3b   : > { %140 = sbr.rel (%p538_p8) target bundleno = 100 (0x64), region = 28  ;;  %p715_p6 = scmp.eq.s32.totalorder (!%p538_p8), %s519_s13, 0 }
  0x42   : > { %453 = dma.done.wait (%p715_p6), [#allocation5], 16   ;;  %p716_p12 = pmov %p715_p6 }
  0x43   : > { %s646_s19 = sand.u32 1, %s470_s10   ;;  %p717_p4 = scmp.ne.s32.totalorder %s707_s15, 0 }
  0x44   : > { %455 = vsyncadd (%p716_p12), [#allocation5], 4294967280  ;;  %s298_s21 = sshll.u32 %s646_s19, 5  ;;  %s147_s20 = scalar_lea.sflag [#allocation3], %s646_s19 }
  0x45   : > { %s150_s24 = scalar_lea.vmem [#allocation6], %s298_s21 }
  0x46   : > { %457 = dma.done.wait (%p717_p4), %s147_s20, 512  }
  0x47   : > { %459 = vsyncadd (%p717_p4), %s147_s20, 4294966784 }
  0x48   : > { %155 = sfence }
  0x49   : > { %s172_s17 = sld [smem:[#allocation2]]  ;;  %s300_s23 = sld [smem:[#allocation2 + $0x1]]  ;;  %v174_v0 = vld [vmem:[%s150_s24] sm:$0xff]  ;;  %v175_v1 = vld [vmem:[%s150_s24 + $0x8] sm:$0xff]  ;;  %v176_v2 = vld [vmem:[%s150_s24 + $0x10] sm:$0xff] }
  0x4a   : > { %v177_v3 = vld [vmem:[%s150_s24 + $0x18] sm:$0xff]  ;;  %s307_s22 = sshll.u32 %s519_s13, 9  ;;  %s171_s25 = scalar_lea.vmem [#allocation7], %s298_s21 }
  0x4b   : > { %s207_s26 = sshll.u32 %s171_s25, 4  ;;  %s658_s28 = scalar_lea.hbm %s703_s2, %s307_s22  ;;  %s660_s26 = int_to_ptr.vmem [resolvable:$true] %s207_s26 }
  0x4c   : > { %s193_s13 = scalar_lea.sflag [#allocation4], %s646_s19  ;;  %s408_s29 = scalar_lea.vmem %s660_s26, 512 }
  0x4d   : > { %p409_p8 = scmp.ne.s32.totalorder %s660_s26, %s408_s29  ;;  %p718_p3 = scmp.ne.s32.totalorder %s713_s6, 0 }
  0x4e   : > { %s482_s30 = smov [#allocation7]  }
  0x4f   : > { %v178_v4 = vstv %s172_s17  ;;  %v183_v6 = vstv %s300_s23  ;;  %p410_p10 = pnand %p409_p8, %p718_p3  ;;  %s412_s3 = sshll.u32 %s482_s30, 4  ;;  %s413_s3 = int_to_ptr.vmem [resolvable:$false] %s412_s3 }
  0x50   : > { %v179_v5 = vmul.f32 %v178_v4, %v174_v0  ;;  %v180_v7 = vmul.f32 %v178_v4, %v175_v1  ;;  %v181_v8 = vmul.f32 %v178_v4, %v176_v2  ;;  %v182_v9 = vmul.f32 %v178_v4, %v177_v3  ;;  %s414_s4 = scalar_lea.vmem %s413_s3, 1024  ;;  %p415_p1 = scmp.lt.s32.totalorder %s660_s26, %s413_s3 }
  0x51   : > { %p411_p5 = pneg %p410_p10  ;;  %p416_p2 = scmp.lt.s32.totalorder %s414_s4, %s408_s29 }
  0x52   : > { %v184_v10 = vadd.f32 %v183_v6, %v179_v5  ;;  %v185_v11 = vadd.f32 %v183_v6, %v180_v7  ;;  %v186_v12 = vadd.f32 %v183_v6, %v181_v8  ;;  %v187_v13 = vadd.f32 %v183_v6, %v182_v9 }
  0x53   : > { %p417_p11 = por %p416_p2, %p415_p1 }
  0x54   : > { %188 = vst [vmem:[%s171_s25] sm:$0xff] %v184_v10  ;;  %189 = vst [vmem:[%s171_s25 + $0x8] sm:$0xff] %v185_v11 }
  0x55   : > { %190 = vst [vmem:[%s171_s25 + $0x10] sm:$0xff] %v186_v12  ;;  %191 = vst [vmem:[%s171_s25 + $0x18] sm:$0xff] %v187_v13  ;;  %p418_p13 = pnand %p417_p11, %p411_p5 }
  0x57   : > { %421 = shalt.err (!%p418_p13)
}
  0x58   : > { %s422_s7 = scalar_lea.hbm %s658_s28, 512  ;;  %s426_s19 = scalar_lea.hbm %s703_s2, 1536 }
  0x59   : > { %p423_p0 = scmp.ne.s32.totalorder %s658_s28, %s422_s7  ;;  %p427_p6 = scmp.lt.u32.totalorder %s658_s28, %s703_s2 }
  0x5a   : > { %p428_p12 = scmp.lt.u32.totalorder %s426_s19, %s422_s7  ;;  %p430_p8 = scmp.lt.u32.totalorder %s422_s7, %s658_s28 }
  0x5b   : > { %p424_p7 = pnand %p423_p0, %p718_p3 }
  0x5c   : > { %p429_p4 = por %p428_p12, %p427_p6 }
  0x5d   : > { %p425_p9 = pneg %p424_p7 }
  0x5e   : > { %p431_p10 = por %p430_p8, %p429_p4 }
  0x60   : > { %p432_p5 = pnand %p431_p10, %p425_p9 }
  0x62   : > { %435 = shalt.err (!%p432_p5)
}
  0x63   : > { %314 = dma.vmem_to_hbm [thread:$0]  (%p718_p3), %s660_s26, 512, %s658_s28, %s193_s13  }
  0x64 PF: > { %p331_p1 = scmp.ge.s32.totalorder %s478_s12, 2  ;;  %s219_s24 = sand.u32 1, %s466_s9  }
  0x65   : > { %p719_p2 = scmp.ne.s32.totalorder %s708_s16, 0  ;;  %s220_s17 = scalar_lea.sflag [#allocation4], %s219_s24 }
  0x67   : > { %p325_p11 = pnand %p331_p1, %p719_p2 }
  0x69   : > { %461 = dma.done.wait (!%p325_p11), %s220_s17, 512  }
  0x6a   : > { %463 = vsyncadd (!%p325_p11), %s220_s17, 4294966784  ;;  %p16_p13 = scmp.ge.s32.totalorder %s543_s18, 5   ;;  %s720_s9 = smov %s470_s10 }
  0x6b   : > { %s721_s10 = smov %s474_s11  ;;  %s722_s11 = smov %s583_s5 }
  0x6c   : > { %s723_s12 = smov %s543_s18  ;;  %18 = sbr.rel (!%p16_p13) target bundleno = 6 (0x6), region = 78 }
  0x73   :  { %225 = vsyncpa [#allocation3], 1 }
  0x74   :  { %227 = vsyncpa [#allocation3 + $0x1], 1 }
  0x75   :  { %228 = vsyncpa [#allocation4], 1 }
  0x76   :  { %230 = vsyncpa [#allocation4 + $0x1], 1 }
  0x77   :  { %231 = vsyncpa [#allocation5], 1 }
  0x78   :  { %233 = vsyncpa [#allocation5 + $0x1], 1 }

</bundles_post_ra>
